<compile_context>
chip_gen: v7x
topology: tpu7x:2x2x1
jax: 0.10.0
libtpu: 0.0.40
codegen_flags: <defaults>
</compile_context>

<pallas_src>
import functools

import jax
import jax.numpy as jnp
from jax.experimental import pallas as pl
from jax.experimental.pallas import tpu as pltpu

_LANES = 128
_MAX_OCC_ROWS = 256        # 256 rows x 128 lanes = 32K points / tile
_MAX_IMG_ROWS = 8192       # 8192 x 128 f32 = 4 MiB chunk (8 MiB double-buffered)


def _round_up(x, m):
    return ((x + m - 1) // m) * m


# ---------------------------------------------------------------------------
# Kernel 1: multi-view point projection.  grid = (B, n_occ_tiles, N_cam)
# (cameras innermost so xyz blocks are reused across consecutive steps)
# ---------------------------------------------------------------------------
def _proj_kernel(proj_ref, xyz_ref, valid_ref, uv_ref):
    # proj_ref  : SMEM (B*N_cam, 16)  row-major 4x4 per camera, rows 0/1
    #             pre-scaled by 1/w and 1/h
    # xyz_ref   : VMEM (1, 3, t_rows, 128)  occ points (x, y, z planes)
    # valid_ref : VMEM (1, t_rows, 128)     int8 = mask & (label != 255)
    # uv_ref    : VMEM (1, 2, t_rows, 128)  normalized image coords
    b = pl.program_id(0)
    c = pl.program_id(2)
    cam = b * pl.num_programs(2) + c

    x = xyz_ref[0, 0]                                   # (t_rows, 128)
    y = xyz_ref[0, 1]
    z = xyz_ref[0, 2]

    def fma_row(i):
        # VPU broadcast-FMA rows; homogeneous "1" term is the scalar P[i, 3].
        return (proj_ref[cam, 4 * i + 0] * x
                + proj_ref[cam, 4 * i + 1] * y
                + proj_ref[cam, 4 * i + 2] * z
                + proj_ref[cam, 4 * i + 3])

    u = fma_row(0)                                      # already scaled by 1/w
    v = fma_row(1)                                      # already scaled by 1/h
    d = fma_row(2)
    d = jnp.where(jnp.abs(d) < 1e-6, jnp.float32(1e-6), d)
    # TODO(synk): pl.reciprocal(d, approx=True) would free VALU slots, but its
    #             ~2^-12 relative error is borderline vs the 1e-3 uv tolerance.
    scale = (1.0 / d) * valid_ref[0].astype(jnp.float32)

    uv_ref[0, 0] = u * scale
    uv_ref[0, 1] = v * scale


# ---------------------------------------------------------------------------
# Kernel 2: per-camera image mean.  grid = (B*N_cam, n_img_chunks)
# ---------------------------------------------------------------------------
def _img_mean_kernel(img_ref, mean_ref, acc_ref, *, inv_count):
    # img_ref  : VMEM (1, nb, 8, 128)  lane/sublane-dense chunk, native dtype
    # mean_ref : VMEM (1, 1, 1)        per-camera mean (f32)
    # acc_ref  : VMEM (8, 128) f32     vector partial sum, persists over chunks
    k = pl.program_id(1)

    @pl.when(k == 0)
    def _():
        acc_ref[...] = jnp.zeros_like(acc_ref)

    # Upcast in-kernel; pure-VPU adds into full (8,128) vregs.
    acc_ref[...] += jnp.sum(img_ref[0].astype(jnp.float32), axis=0)

    @pl.when(k == pl.num_programs(1) - 1)
    def _():
        # Single cross-lane/sublane reduce per camera.
        s = jnp.sum(acc_ref[...]) * jnp.float32(inv_count)
        mean_ref[...] = s.reshape(1, 1, 1)


def synthetic_f(imgs, metas):
    """Synthetic stand-in for the external model wrapped by TOSAVE."""
    projection_mat = metas['projection_mat'].astype(jnp.float32)
    image_wh = metas['image_wh'].astype(jnp.float32)
    occ_xyz = metas['occ_xyz'].astype(jnp.float32)
    occ_label = metas['occ_label'].astype(jnp.int32)
    occ_cam_mask = metas['occ_cam_mask']

    B, N_cam, C, H, W = imgs.shape
    N_occ = occ_xyz.shape[1]
    n_cams = B * N_cam

    # ---- projection path (sublane-dense, camera-innermost grid) ------------
    r_occ = pl.cdiv(N_occ, _LANES)
    t_rows = min(_MAX_OCC_ROWS, _round_up(r_occ, 32))   # 32: int8 sublane tile
    r_pad = _round_up(r_occ, t_rows)
    n_pad = r_pad * _LANES
    pad = n_pad - N_occ

    xyz_t = jnp.transpose(occ_xyz, (0, 2, 1))                      # (B, 3, N_occ)
    valid = jnp.logical_and(occ_cam_mask.astype(jnp.bool_),
                            (occ_label != 255)[:, None, :]).astype(jnp.int8)
    if pad:
        xyz_t = jnp.pad(xyz_t, ((0, 0), (0, 0), (0, pad)))
        valid = jnp.pad(valid, ((0, 0), (0, 0), (0, pad)))
    xyz_l = xyz_t.reshape(B, 3, r_pad, _LANES)
    valid_l = valid.reshape(n_cams, r_pad, _LANES)

    # Fold 1/w, 1/h into rows 0/1 of the projection matrices (SMEM scalars).
    row_scale = jnp.concatenate(
        [1.0 / image_wh, jnp.ones((B, N_cam, 2), jnp.float32)], axis=-1)
    proj_smem = (projection_mat * row_scale[..., None]).reshape(n_cams, 16)

    n_tiles = r_pad // t_rows
    uv4 = pl.pallas_call(
        _proj_kernel,
        out_shape=jax.ShapeDtypeStruct((n_cams, 2, r_pad, _LANES), jnp.float32),
        grid=(B, n_tiles, N_cam),                   # cameras innermost: xyz reuse
        in_specs=[
            pl.BlockSpec(memory_space=pltpu.MemorySpace.SMEM),      # proj mats
            pl.BlockSpec((1, 3, t_rows, _LANES), lambda b, t, c: (b, 0, t, 0)),
            pl.BlockSpec((1, t_rows, _LANES),
                         lambda b, t, c: (b * N_cam + c, t, 0)),
        ],
        out_specs=pl.BlockSpec((1, 2, t_rows, _LANES),
                               lambda b, t, c: (b * N_cam + c, 0, t, 0)),
        compiler_params=pltpu.CompilerParams(
            dimension_semantics=("parallel", "parallel", "parallel")),
        cost_estimate=pl.CostEstimate(
            flops=32 * B * N_cam * n_pad,
            transcendentals=0,
            bytes_accessed=(4 * xyz_l.size + valid_l.size
                            + 4 * n_cams * 2 * n_pad + 4 * proj_smem.size)),
    )(proj_smem, xyz_l, valid_l)
    uv = uv4.reshape(B, N_cam, 2, n_pad)
    if pad:
        uv = uv[..., :N_occ]

    # ---- per-camera image mean (memory-bound, lane/sublane-dense, chunked) --
    total = C * H * W
    r_full = pl.cdiv(total, _LANES)
    r_blk = min(_MAX_IMG_ROWS, _round_up(r_full, 8))    # multiple of 8 sublanes
    r_img = _round_up(r_full, r_blk)
    cols = r_img * _LANES

    img2d = imgs.reshape(n_cams, total)                 # native dtype, no f32 copy
    if cols != total:
        # Zero pad does not change the sum; we divide by the true element count.
        img2d = jnp.pad(img2d, ((0, 0), (0, cols - total)))
    img4 = img2d.reshape(n_cams, r_img // 8, 8, _LANES)
    n_chunks = r_img // r_blk
    nb = r_blk // 8

    mean_flat = pl.pallas_call(
        functools.partial(_img_mean_kernel, inv_count=1.0 / total),
        out_shape=jax.ShapeDtypeStruct((n_cams, 1, 1), jnp.float32),
        grid=(n_cams, n_chunks),
        in_specs=[pl.BlockSpec((1, nb, 8, _LANES), lambda i, k: (i, k, 0, 0))],
        out_specs=pl.BlockSpec((1, 1, 1), lambda i, k: (i, 0, 0)),
        scratch_shapes=[pltpu.VMEM((8, _LANES), jnp.float32)],
        compiler_params=pltpu.CompilerParams(
            dimension_semantics=("parallel", "arbitrary"),
            vmem_limit_bytes=32 * 1024 * 1024),
        cost_estimate=pl.CostEstimate(
            flops=img4.size,
            transcendentals=0,
            bytes_accessed=img4.size * img4.dtype.itemsize + n_cams * 4),
    )(img4)
    img_mean = mean_flat.reshape(B, N_cam, 1, 1)

    return {'proj_uv': uv, 'img_mean': img_mean}


class TOSAVE:
    """Exact forward semantics of the PyTorch TOSAVE wrapper."""

    def __init__(self, f):
        self.f = f

    def __call__(self, img, projection_mat, image_wh, occ_xyz, occ_label,
                 occ_cam_mask):
        meta = dict()
        meta['projection_mat'] = projection_mat
        meta['image_wh'] = image_wh
        meta['occ_xyz'] = occ_xyz
        meta['occ_label'] = occ_label
        meta['occ_cam_mask'] = occ_cam_mask
        return self.f(imgs=img, metas=meta)


def _reference(img, projection_mat, image_wh, occ_xyz, occ_label, occ_cam_mask):
    """Plain-JAX reference of synthetic_f for a sanity check."""
    B, N_cam = projection_mat.shape[:2]
    ones = jnp.ones(occ_xyz.shape[:-1] + (1,), jnp.float32)
    pts_h = jnp.concatenate([occ_xyz.astype(jnp.float32), ones], -1)       # (B,N,4)
    proj = jnp.einsum('bcij,bnj->bcin', projection_mat.astype(jnp.float32),
                      pts_h, precision='highest')                          # (B,C,4,N)
    depth = proj[:, :, 2:3]
    depth = jnp.where(jnp.abs(depth) < 1e-6, 1e-6, depth)
    uv = proj[:, :, :2] / depth
    uv = uv / image_wh.astype(jnp.float32)[..., None]
    valid = (occ_cam_mask.astype(jnp.float32)[:, :, None, :]
             * (occ_label != 255).astype(jnp.float32)[:, None, None, :])
    uv = uv * valid
    img_mean = img.astype(jnp.float32).mean(axis=(2, 3, 4)).reshape(B, N_cam, 1, 1)
    return uv, img_mean, depth


if __name__ == "__main__":
    B, N_cam, C, H, W, N_occ = 2, 2, 3, 16, 16, 128

    key = jax.random.PRNGKey(0)
    k_img, k_proj, k_wh, k_xyz, k_lab, k_ign, k_mask = jax.random.split(key, 7)

    img = jax.random.normal(k_img, (B, N_cam, C, H, W), jnp.float32)
    projection_mat = jax.random.normal(k_proj, (B, N_cam, 4, 4), jnp.float32)
    image_wh = jax.random.uniform(k_wh, (B, N_cam, 2), jnp.float32,
                                  minval=100.0, maxval=200.0)
    occ_xyz = jax.random.normal(k_xyz, (B, N_occ, 3), jnp.float32)
    labels = jax.random.randint(k_lab, (B, N_occ), 0, 18, jnp.int32)
    occ_label = jnp.where(jax.random.uniform(k_ign, (B, N_occ)) < 0.1, 255, labels)
    occ_cam_mask = jax.random.bernoulli(k_mask, 0.7, (B, N_cam, N_occ))

    model = TOSAVE(synthetic_f)
    out = model(img, projection_mat, image_wh, occ_xyz, occ_label, occ_cam_mask)
    out = jax.block_until_ready(out)

    uv, img_mean = out['proj_uv'], out['img_mean']
    assert uv.shape == (B, N_cam, 2, N_occ) and img_mean.shape == (B, N_cam, 1, 1)
    assert bool(jnp.all(jnp.isfinite(uv))) and bool(jnp.all(jnp.isfinite(img_mean)))

    # Sanity check vs plain-JAX reference (skip near-zero depths, where the
    # division amplifies tiny rounding differences).
    uv_ref, mean_ref, depth_ref = _reference(
        img, projection_mat, image_wh, occ_xyz, occ_label, occ_cam_mask)
    safe = jnp.abs(depth_ref) > 0.1                       # (B, N_cam, 1, N_occ)
    diff = jnp.where(safe, jnp.abs(uv - uv_ref), 0.0)
    scale = jnp.where(safe, jnp.abs(uv_ref), 0.0)
    assert bool(jnp.all(diff <= 1e-3 + 1e-3 * scale)), "uv mismatch vs reference"
    assert bool(jnp.allclose(img_mean, mean_ref, rtol=1e-4, atol=1e-5)), \
        "img_mean mismatch vs reference"

    print("KERNEL_OK")
</pallas_src>

<mosaic_0001>
module attributes {stable_mosaic.version = 11 : i64} {
  func.func @_proj_kernel(%arg0: i32, %arg1: i32, %arg2: i32, %arg3: memref<4x16xf32, #tpu.memory_space<smem>>, %arg4: memref<1x3x32x128xf32, #tpu.memory_space<vmem>>, %arg5: memref<1x32x128xi8, #tpu.memory_space<vmem>>, %arg6: memref<1x2x32x128xf32, #tpu.memory_space<vmem>>) attributes {dimension_semantics = [#tpu.dimension_semantics<parallel>, #tpu.dimension_semantics<parallel>, #tpu.dimension_semantics<parallel>], iteration_bounds = array<i64: 2, 1, 2>, scalar_prefetch = 0 : i64, scratch_operands = 0 : i64, tpu.core_type = #tpu.core_type<tc>, window_params = [{transform_indices = @transform_0, window_bounds = array<i64: 4, 16>}, {transform_indices = @transform_1, window_bounds = array<i64: 1, 3, 32, 128>}, {transform_indices = @transform_2, window_bounds = array<i64: 1, 32, 128>}, {transform_indices = @transform_3, window_bounds = array<i64: 1, 2, 32, 128>}]} {
    %c2_i32 = arith.constant 2 : i32
    %0 = arith.muli %arg0, %c2_i32 : i32
    %1 = arith.addi %0, %arg2 : i32
    %c0 = arith.constant 0 : index
    %c0_0 = arith.constant 0 : index
    %c0_1 = arith.constant 0 : index
    %c0_2 = arith.constant 0 : index
    %2 = vector.load %arg4[%c0, %c0_0, %c0_1, %c0_2] : memref<1x3x32x128xf32, #tpu.memory_space<vmem>>, vector<1x1x32x128xf32>
    %3 = vector.shape_cast %2 : vector<1x1x32x128xf32> to vector<32x128xf32>
    %c0_3 = arith.constant 0 : index
    %c1 = arith.constant 1 : index
    %c0_4 = arith.constant 0 : index
    %c0_5 = arith.constant 0 : index
    %4 = vector.load %arg4[%c0_3, %c1, %c0_4, %c0_5] : memref<1x3x32x128xf32, #tpu.memory_space<vmem>>, vector<1x1x32x128xf32>
    %5 = vector.shape_cast %4 : vector<1x1x32x128xf32> to vector<32x128xf32>
    %c0_6 = arith.constant 0 : index
    %c2 = arith.constant 2 : index
    %c0_7 = arith.constant 0 : index
    %c0_8 = arith.constant 0 : index
    %6 = vector.load %arg4[%c0_6, %c2, %c0_7, %c0_8] : memref<1x3x32x128xf32, #tpu.memory_space<vmem>>, vector<1x1x32x128xf32>
    %7 = vector.shape_cast %6 : vector<1x1x32x128xf32> to vector<32x128xf32>
    %8 = arith.index_cast %1 : i32 to index
    %c0_9 = arith.constant 0 : index
    %9 = memref.load %arg3[%8, %c0_9] : memref<4x16xf32, #tpu.memory_space<smem>>
    %10 = vector.broadcast %9 : f32 to vector<32x128xf32>
    %11 = arith.mulf %10, %3 : vector<32x128xf32>
    %12 = arith.index_cast %1 : i32 to index
    %c1_10 = arith.constant 1 : index
    %13 = memref.load %arg3[%12, %c1_10] : memref<4x16xf32, #tpu.memory_space<smem>>
    %14 = vector.broadcast %13 : f32 to vector<32x128xf32>
    %15 = arith.mulf %14, %5 : vector<32x128xf32>
    %16 = arith.addf %11, %15 : vector<32x128xf32>
    %17 = arith.index_cast %1 : i32 to index
    %c2_11 = arith.constant 2 : index
    %18 = memref.load %arg3[%17, %c2_11] : memref<4x16xf32, #tpu.memory_space<smem>>
    %19 = vector.broadcast %18 : f32 to vector<32x128xf32>
    %20 = arith.mulf %19, %7 : vector<32x128xf32>
    %21 = arith.addf %16, %20 : vector<32x128xf32>
    %22 = arith.index_cast %1 : i32 to index
    %c3 = arith.constant 3 : index
    %23 = memref.load %arg3[%22, %c3] : memref<4x16xf32, #tpu.memory_space<smem>>
    %24 = vector.broadcast %23 : f32 to vector<32x128xf32>
    %25 = arith.addf %21, %24 : vector<32x128xf32>
    %26 = arith.index_cast %1 : i32 to index
    %c4 = arith.constant 4 : index
    %27 = memref.load %arg3[%26, %c4] : memref<4x16xf32, #tpu.memory_space<smem>>
    %28 = vector.broadcast %27 : f32 to vector<32x128xf32>
    %29 = arith.mulf %28, %3 : vector<32x128xf32>
    %30 = arith.index_cast %1 : i32 to index
    %c5 = arith.constant 5 : index
    %31 = memref.load %arg3[%30, %c5] : memref<4x16xf32, #tpu.memory_space<smem>>
    %32 = vector.broadcast %31 : f32 to vector<32x128xf32>
    %33 = arith.mulf %32, %5 : vector<32x128xf32>
    %34 = arith.addf %29, %33 : vector<32x128xf32>
    %35 = arith.index_cast %1 : i32 to index
    %c6 = arith.constant 6 : index
    %36 = memref.load %arg3[%35, %c6] : memref<4x16xf32, #tpu.memory_space<smem>>
    %37 = vector.broadcast %36 : f32 to vector<32x128xf32>
    %38 = arith.mulf %37, %7 : vector<32x128xf32>
    %39 = arith.addf %34, %38 : vector<32x128xf32>
    %40 = arith.index_cast %1 : i32 to index
    %c7 = arith.constant 7 : index
    %41 = memref.load %arg3[%40, %c7] : memref<4x16xf32, #tpu.memory_space<smem>>
    %42 = vector.broadcast %41 : f32 to vector<32x128xf32>
    %43 = arith.addf %39, %42 : vector<32x128xf32>
    %44 = arith.index_cast %1 : i32 to index
    %c8 = arith.constant 8 : index
    %45 = memref.load %arg3[%44, %c8] : memref<4x16xf32, #tpu.memory_space<smem>>
    %46 = vector.broadcast %45 : f32 to vector<32x128xf32>
    %47 = arith.mulf %46, %3 : vector<32x128xf32>
    %48 = arith.index_cast %1 : i32 to index
    %c9 = arith.constant 9 : index
    %49 = memref.load %arg3[%48, %c9] : memref<4x16xf32, #tpu.memory_space<smem>>
    %50 = vector.broadcast %49 : f32 to vector<32x128xf32>
    %51 = arith.mulf %50, %5 : vector<32x128xf32>
    %52 = arith.addf %47, %51 : vector<32x128xf32>
    %53 = arith.index_cast %1 : i32 to index
    %c10 = arith.constant 10 : index
    %54 = memref.load %arg3[%53, %c10] : memref<4x16xf32, #tpu.memory_space<smem>>
    %55 = vector.broadcast %54 : f32 to vector<32x128xf32>
    %56 = arith.mulf %55, %7 : vector<32x128xf32>
    %57 = arith.addf %52, %56 : vector<32x128xf32>
    %58 = arith.index_cast %1 : i32 to index
    %c11 = arith.constant 11 : index
    %59 = memref.load %arg3[%58, %c11] : memref<4x16xf32, #tpu.memory_space<smem>>
    %60 = vector.broadcast %59 : f32 to vector<32x128xf32>
    %61 = arith.addf %57, %60 : vector<32x128xf32>
    %62 = math.absf %61 : vector<32x128xf32>
    %cst = arith.constant 9.99999997E-7 : f32
    %63 = vector.broadcast %cst : f32 to vector<32x128xf32>
    %64 = arith.cmpf olt, %62, %63 : vector<32x128xf32>
    %cst_12 = arith.constant 9.99999997E-7 : f32
    %65 = vector.broadcast %cst_12 : f32 to vector<32x128xf32>
    %66 = arith.select %64, %65, %61 : vector<32x128xi1>, vector<32x128xf32>
    %cst_13 = arith.constant 1.000000e+00 : f32
    %67 = vector.broadcast %cst_13 : f32 to vector<32x128xf32>
    %68 = arith.divf %67, %66 : vector<32x128xf32>
    %c0_14 = arith.constant 0 : index
    %c0_15 = arith.constant 0 : index
    %c0_16 = arith.constant 0 : index
    %69 = vector.load %arg5[%c0_14, %c0_15, %c0_16] : memref<1x32x128xi8, #tpu.memory_space<vmem>>, vector<1x32x128xi8>
    %70 = vector.shape_cast %69 : vector<1x32x128xi8> to vector<32x128xi8>
    %71 = arith.sitofp %70 : vector<32x128xi8> to vector<32x128xf32>
    %72 = arith.mulf %68, %71 : vector<32x128xf32>
    %73 = arith.mulf %25, %72 : vector<32x128xf32>
    %c0_17 = arith.constant 0 : index
    %c0_18 = arith.constant 0 : index
    %c0_19 = arith.constant 0 : index
    %c0_20 = arith.constant 0 : index
    %74 = vector.load %arg6[%c0_17, %c0_18, %c0_19, %c0_20] : memref<1x2x32x128xf32, #tpu.memory_space<vmem>>, vector<1x1x32x128xf32>
    %75 = vector.shape_cast %74 : vector<1x1x32x128xf32> to vector<32x128xf32>
    %76 = vector.shape_cast %73 : vector<32x128xf32> to vector<1x1x32x128xf32>
    tpu.vector_store %arg6[%c0_17, %c0_18, %c0_19, %c0_20], %76 {strides = array<i32>} : memref<1x2x32x128xf32, #tpu.memory_space<vmem>>, vector<1x1x32x128xf32>,
    %77 = arith.mulf %43, %72 : vector<32x128xf32>
    %c0_21 = arith.constant 0 : index
    %c1_22 = arith.constant 1 : index
    %c0_23 = arith.constant 0 : index
    %c0_24 = arith.constant 0 : index
    %78 = vector.load %arg6[%c0_21, %c1_22, %c0_23, %c0_24] : memref<1x2x32x128xf32, #tpu.memory_space<vmem>>, vector<1x1x32x128xf32>
    %79 = vector.shape_cast %78 : vector<1x1x32x128xf32> to vector<32x128xf32>
    %80 = vector.shape_cast %77 : vector<32x128xf32> to vector<1x1x32x128xf32>
    tpu.vector_store %arg6[%c0_21, %c1_22, %c0_23, %c0_24], %80 {strides = array<i32>} : memref<1x2x32x128xf32, #tpu.memory_space<vmem>>, vector<1x1x32x128xf32>,
    return
  }
  func.func @transform_0(%arg0: i32, %arg1: i32, %arg2: i32) -> (i32, i32) {
    %c0_i32 = arith.constant 0 : i32
    %c0_i32_0 = arith.constant 0 : i32
    %c0_i32_1 = arith.constant 0 : i32
    return %c0_i32, %c0_i32_0 : i32, i32
  }
  func.func @transform_1(%arg0: i32, %arg1: i32, %arg2: i32) -> (i32, i32, i32, i32) {
    %c0_i32 = arith.constant 0 : i32
    %c0_i32_0 = arith.constant 0 : i32
    %c0_i32_1 = arith.constant 0 : i32
    return %arg0, %c0_i32, %arg1, %c0_i32_0 : i32, i32, i32, i32
  }
  func.func @transform_2(%arg0: i32, %arg1: i32, %arg2: i32) -> (i32, i32, i32) {
    %c2_i32 = arith.constant 2 : i32
    %0 = arith.muli %arg0, %c2_i32 : i32
    %1 = arith.addi %0, %arg2 : i32
    %c0_i32 = arith.constant 0 : i32
    %c0_i32_0 = arith.constant 0 : i32
    return %1, %arg1, %c0_i32 : i32, i32, i32
  }
  func.func @transform_3(%arg0: i32, %arg1: i32, %arg2: i32) -> (i32, i32, i32, i32) {
    %c2_i32 = arith.constant 2 : i32
    %0 = arith.muli %arg0, %c2_i32 : i32
    %1 = arith.addi %0, %arg2 : i32
    %c0_i32 = arith.constant 0 : i32
    %c0_i32_0 = arith.constant 0 : i32
    %c0_i32_1 = arith.constant 0 : i32
    return %1, %c0_i32, %arg1, %c0_i32_0 : i32, i32, i32, i32
  }
}

</mosaic_0001>

<bundles_post_ra>
// kernel: tpu_custom_call.1
= control target key start
LH: loop header
LB: loop body
LE: loop exit
PB: predicated region body
PF: predicated region fallthrough
CT: control target
= control target key end

     0   :  { %s1483_s0 = inlined_call_operand.hbm [shape: f32[4,16], index: 0, kind: input, shape index: {}]   ;;  %s1484_s1 = inlined_call_operand.hbm [shape: f32[2,3,32,128], index: 1, kind: input, shape index: {}]   ;;  %s1485_s2 = inlined_call_operand.hbm [shape: s8[4,32,128], index: 2, kind: input, shape index: {}]   ;;  %s1486_s3 = inlined_call_operand.hbm [shape: f32[4,2,32,128], index: 3, kind: output, shape index: {}]  }
   0x1   :  { %1499 = sst [smem:[#allocation19_spill]] %s1483_s0 }
   0x2   :  { %1500 = sst [smem:[#allocation20_spill]] %s1484_s1 }
   0x3   :  { %1501 = sst [smem:[#allocation21_spill]] %s1486_s3 }
   0x4   :  { %8 = vsyncpa [#allocation5], 0 }
   0x5   :  { %9 = vsyncpa [#allocation3], 0 }
   0x6   :  { %11 = vsyncpa [#allocation3 + $0x1], 0 }
   0x7   :  { %12 = vsyncpa [#allocation8], 0 }
   0x8   :  { %14 = vsyncpa [#allocation8 + $0x1], 0 }
   0x9   :  { %15 = vsyncpa [#allocation4], 0 }
   0xa   :  { %17 = vsyncpa [#allocation4 + $0x1], 0  ;;  %s1011_s12 = smov 0   ;;  %s1013_s13 = smov 0  }
   0xb   :  { %s1015_s14 = smov 0   ;;  %s1017_s15 = smov 0  }
   0xc   :  { %s1019_s16 = smov 0   ;;  %s1021_s17 = smov 0  }
   0xd   :  { %s1023_s18 = smov 0   ;;  %s1025_s19 = smov 0  }
   0xe   :  { %s1027_s20 = smov 0   ;;  %s1029_s21 = smov 0  }
   0xf   :  { %s1031_s22 = smov 0  }
  0x10 LB: > { %1502 = sst [smem:[#allocation14_spill]] %s941_s12  ;;  %s607_s23 = sadd.s32 4294967295, %s981_s22   ;;  %s981_s22 = sphi %s1031_s22, %s23_s22   ;;  %s977_s21 = sphi %s1029_s21, %s1543_s21   ;;  %s973_s20 = sphi %s1027_s20, %s1542_s20   ;;  %s969_s19 = sphi %s1025_s19, %s1541_s19   ;;  %s965_s18 = sphi %s1023_s18, %s1534_s18   ;;  %s961_s17 = sphi %s1021_s17, %s1540_s17   ;;  %s957_s16 = sphi %s1019_s16, %s1539_s16   ;;  %s953_s15 = sphi %s1017_s15, %s1538_s15   ;;  %s949_s14 = sphi %s1015_s14, %s1537_s14   ;;  %s945_s13 = sphi %s1013_s13, %s1536_s13   ;;  %s941_s12 = sphi %s1011_s12, %s1535_s12  }
  0x11   : > { %1503 = sst [smem:[#allocation15_spill]] %s965_s18  ;;  %s608_s24 = sadd.s32 4294967294, %s981_s22  }
  0x12   : > { %1504 = sst [smem:[#allocation16_spill]] %s973_s20  ;;  %p85_p0 = scmp.ne.s32.totalorder %s957_s16, %s953_s15 }
  0x13   : > { %p1067_p1 = scmp.eq.s32.totalorder %s607_s23, 0  ;;  %p117_p2 = scmp.ne.s32.totalorder %s945_s13, %s941_s12 }
  0x14   : > { %p1073_p3 = scmp.eq.s32.totalorder %s607_s23, 3  ;;  %p153_p5 = scmp.eq.s32.totalorder %s608_s24, 3 }
  0x15   : > { %s1505_s25 = scalar_select %p1067_p1, 1, 0 }
  0x16   : > { %p1079_p4 = por %p1067_p1, %p85_p0  ;;  %p1085_p6 = por %p117_p2, %p1067_p1 }
  0x17   : > { %p613_p7 = scmp.ge.s32.totalorder %s981_s22, 1  ;;  %p1090_p8 = por %p153_p5, %p117_p2 }
  0x18   : > { %s1507_s27 = scalar_select %p1079_p4, 1, 0 }
  0x19   : > { %s1508_s28 = scalar_select %p1085_p6, 1, 0 }
  0x1a   : > { %s1509_s29 = scalar_select %p1090_p8, 1, 0 }
  0x1b   : > { %p160_p9 = scmp.lt.s32.totalorder %s981_s22, 5  ;;  %p79_p0 = scmp.ne.s32.totalorder %s961_s17, %s957_s16 }
  0x1c   : > { %1510 = sst [smem:[#allocation17_spill]] %s1509_s29  ;;  %p1488_p2 = scmp.lt.s32.totalorder %s981_s22, 4 }
  0x1d   : > { %p1095_p10 = pnand %p613_p7, %p160_p9  ;;  %s182_s6 = sand.u32 1, %s961_s17  }
  0x1e   : > { %s1513_s0 = sld [smem:[#allocation19_spill]] }
  0x1f   : > { %s1511_s30 = scalar_select %p1095_p10, 1, 0 }
  0x20   : > { %p658_p11 = pneg %p1095_p10 }
  0x22   : > { %p1104_p13 = pnand %p658_p11, %p1067_p1 }
  0x24   : > { %s778_s9 = scalar_lea.hbm %s1513_s0, 64  ;;  %p780_p7 = pneg %p1104_p13 }
  0x25   : > { %p779_p5 = scmp.ne.s32.totalorder %s1513_s0, %s778_s9  ;;  %p785_p12 = scmp.lt.u32.totalorder %s778_s9, %s1513_s0 }
  0x27   : > { %p781_p9 = pnand %p780_p7, %p779_p5 }
  0x29   : > { %p782_p11 = pneg %p781_p9 }
  0x2b   : > { %p787_p8 = pnand %p785_p12, %p782_p11 }
  0x2d   : > { %790 = shalt.err (!%p787_p8)
}
  0x2e   : > { %s983_s24 = smov [#allocation2]   ;;  %p1514_p5 = scmp.eq.s32.totalorder %s981_s22, 0 }
  0x2f   : > { %661 = dma.hbm_to_smem (!%p1104_p13), %s1513_s0, 64, %s983_s24, [#allocation5]  }
  0x30   : > { %p81_p7 = por %p1514_p5, %p79_p0  ;;  %s645_s8 = smul.u32 96, %s182_s6 }
  0x31   : > { %s646_s10 = smul.u32 1536, %s977_s21  ;;  %s1516_s1 = sld [smem:[#allocation20_spill]] }
  0x32   : > { %p1137_p12 = pnand %p1488_p2, %p81_p7  ;;  %s186_s15 = scalar_lea.vmem [#allocation6], %s645_s8 }
  0x33   : > { %s195_s23 = sshll.u32 %s186_s15, 4  ;;  %s1148_s24 = scalar_lea.sflag [#allocation3], %s182_s6  ;;  %s1146_s23 = int_to_ptr.vmem [resolvable:$true] %s195_s23 }
  0x34   : > { %p793_p13 = pneg %p1137_p12 }
  0x37   : > { %s1144_s5 = scalar_lea.hbm %s1516_s1, %s646_s10  ;;  %s796_s11 = scalar_lea.hbm %s1516_s1, 3072 }
  0x38   : > { %s791_s7 = scalar_lea.hbm %s1144_s5, 1536  ;;  %p797_p11 = scmp.lt.u32.totalorder %s1144_s5, %s1516_s1 }
  0x39   : > { %p792_p8 = scmp.ne.s32.totalorder %s1144_s5, %s791_s7  ;;  %p798_p5 = scmp.lt.u32.totalorder %s796_s11, %s791_s7 }
  0x3a   : > { %p800_p2 = scmp.lt.u32.totalorder %s791_s7, %s1144_s5 }
  0x3b   : > { %p794_p0 = pnand %p793_p13, %p792_p8  ;;  %p799_p7 = por %p798_p5, %p797_p11 }
  0x3d   : > { %p795_p9 = pneg %p794_p0  ;;  %p801_p6 = por %p800_p2, %p799_p7 }
  0x3f   : > { %p802_p4 = pnand %p801_p6, %p795_p9 }
  0x41   : > { %805 = shalt.err (!%p802_p4)
}
  0x42   : > { %s806_s6 = scalar_lea.vmem %s1146_s23, 1536  ;;  %s984_s8 = smov [#allocation6]  }
  0x43   : > { %p807_p8 = scmp.ne.s32.totalorder %s1146_s23, %s806_s6  ;;  %s811_s15 = sshll.u32 %s984_s8, 4  ;;  %s812_s15 = int_to_ptr.vmem [resolvable:$false] %s811_s15 }
  0x44   : > { %s813_s0 = scalar_lea.vmem %s812_s15, 3072  ;;  %p814_p10 = scmp.lt.s32.totalorder %s1146_s23, %s812_s15 }
  0x45   : > { %p809_p0 = pnand %p807_p8, %p793_p13  ;;  %p815_p11 = scmp.lt.s32.totalorder %s813_s0, %s806_s6 }
  0x47   : > { %p810_p1 = pneg %p809_p0  ;;  %p816_p5 = por %p815_p11, %p814_p10 }
  0x49   : > { %p817_p2 = pnand %p816_p5, %p810_p1 }
  0x4b   : > { %820 = shalt.err (!%p817_p2)
}
  0x4c   : > { %s985_s29 = smov 128   ;;  %s986_s7 = smov 8  }
  0x4d   : > { %665 = dma.hbm_to_vmem [thread:$0]  (!%p1137_p12), %s1144_s5, 1536, %s1146_s23, %s1148_s24, %s985_s29, %s985_s29, %s986_s7  }
  0x4e   : > { %s35_s10 = sadd.s32 1, %s973_s20  ;;  %s42_s4 = sadd.s32 1, %s977_s21 }
  0x4f   : > { %p36_p1 = scmp.ge.s32.totalorder %s35_s10, 2  ;;  %s609_s11 = sshll.u32 %s977_s21, 1 }
  0x50   : > { %s96_s6 = sadd.s32 %s973_s20, %s609_s11  ;;  %s104_s8 = sadd.s32 1, %s949_s14 }
  0x51   : > { %s1545_s10 = smov (%p36_p1, %s35_s10), 0  ;;  %s1547_s4 = smov (!%p36_p1, %s42_s4), %s977_s21 }
  0x52   : > { %p111_p4 = scmp.ne.s32.totalorder %s949_s14, %s945_s13  ;;  %s205_s15 = sand.u32 1, %s949_s14  }
  0x53   : > { %p44_p6 = scmp.ge.s32.totalorder %s1547_s4, 2  ;;  %p1517_p10 = scmp.eq.s32.totalorder %s981_s22, 0 }
  0x54   : > { %p1195_p12 = por %p1073_p3, %p111_p4  ;;  %s617_s23 = sshll.u32 %s205_s15, 3 }
  0x55   : > { %p1189_p13 = por %p111_p4, %p1517_p10  ;;  %s1549_s4 = smov (%p44_p6, %s1547_s4), 0 }
  0x56   : > { %s1519_s5 = scalar_select %p1195_p12, 1, 0 }
  0x57   : > { %s619_s24 = sshll.u32 %s96_s6, 7  ;;  %s67_s0 = ssub.s32 %s977_s21, %s1549_s4 }
  0x58   : > { %1520 = sst [smem:[#allocation18_spill]] %s1519_s5  ;;  %s610_s29 = sshll.u32 %s1549_s4, 1 }
  0x59   : > { %p70_p9 = scmp.eq.s32.totalorder %s67_s0, 0  ;;  %s98_s7 = sadd.s32 %s610_s29, %s1545_s10 }
  0x5a   : > { %s99_s11 = ssub.s32 %s96_s6, %s98_s7  ;;  %s1521_s1 = sadd.s32 1, %s961_s17 }
  0x5b   : > { %s1208_s20 = scalar_select %p70_p9, %s961_s17, %s1521_s1  }
  0x5c   : > { %p102_p7 = scmp.eq.s32.totalorder %s99_s11, 0  ;;  %s1213_s3 = scalar_lea.hbm %s1485_s2, %s619_s24 }
  0x5d   : > { %s209_s5 = scalar_lea.vmem [#allocation7], %s617_s23  ;;  %p1522_p3 = scmp.lt.s32.totalorder %s981_s22, 4 }
  0x5e   : > { %s219_s18 = sshll.u32 %s209_s5, 4  ;;  %s206_s12 = scalar_lea.sflag [#allocation8], %s205_s15  ;;  %s1226_s18 = int_to_ptr.vmem [resolvable:$true] %s219_s18 }
  0x5f   : > { %p1219_p8 = pnand %p1522_p3, %p1189_p13  ;;  %s821_s6 = scalar_lea.hbm %s1213_s3, 128 }
  0x60   : > { %s1224_s1 = scalar_select %p102_p7, %s949_s14, %s104_s8  }
  0x61   : > { %p822_p0 = scmp.ne.s32.totalorder %s1213_s3, %s821_s6  ;;  %p823_p11 = pneg %p1219_p8 }
  0x62   : > { %s826_s23 = scalar_lea.hbm %s1485_s2, 512  ;;  %p827_p1 = scmp.lt.u32.totalorder %s1213_s3, %s1485_s2 }
  0x63   : > { %p824_p5 = pnand %p823_p11, %p822_p0  ;;  %p828_p4 = scmp.lt.u32.totalorder %s826_s23, %s821_s6 }
  0x64   : > { %p830_p10 = scmp.lt.u32.totalorder %s821_s6, %s1213_s3 }
  0x65   : > { %p825_p2 = pneg %p824_p5  ;;  %p829_p6 = por %p828_p4, %p827_p1 }
  0x67   : > { %p831_p13 = por %p830_p10, %p829_p6 }
  0x69   : > { %p832_p9 = pnand %p831_p13, %p825_p2 }
  0x6b   : > { %835 = shalt.err (!%p832_p9)
}
  0x6c   : > { %s836_s8 = scalar_lea.vmem %s1226_s18, 128  ;;  %s987_s15 = smov [#allocation7]  }
  0x6d   : > { %p837_p7 = scmp.ne.s32.totalorder %s1226_s18, %s836_s8  ;;  %s841_s7 = sshll.u32 %s987_s15, 4  ;;  %s842_s7 = int_to_ptr.vmem [resolvable:$false] %s841_s7 }
  0x6e   : > { %s843_s11 = scalar_lea.vmem %s842_s7, 256  ;;  %p844_p5 = scmp.lt.s32.totalorder %s1226_s18, %s842_s7 }
  0x6f   : > { %p839_p3 = pnand %p837_p7, %p823_p11  ;;  %p845_p1 = scmp.lt.s32.totalorder %s843_s11, %s836_s8 }
  0x71   : > { %p840_p0 = pneg %p839_p3  ;;  %p846_p4 = por %p845_p1, %p844_p5 }
  0x73   : > { %p847_p6 = pnand %p846_p4, %p840_p0 }
  0x75   : > { %850 = shalt.err (!%p847_p6)
}
  0x76   : > { %668 = dma.hbm_to_vmem [thread:$0]  (!%p1219_p8), %s1213_s3, 128, %s1226_s18, %s206_s12  }
  0x77   : > { %p1524_p2 = scmp.ne.s32.totalorder %s1511_s30, 0 }
  0x78   : > { %p1525_p11 = scmp.ne.s32.totalorder (!%p1524_p2), %s1505_s25, 0 }
  0x79   : > { %228 = sbr.rel (%p1524_p2) target bundleno = 205 (0xcd), region = 32 }
  0x80   : > { %924 = dma.done.wait (%p1525_p11), [#allocation5], 64  }
  0x81   : > { %926 = vsyncadd (%p1525_p11), [#allocation5], 4294967232  ;;  %s234_s26 = sand.u32 1, %s957_s16   ;;  %p1526_p10 = scmp.ne.s32.totalorder %s1507_s27, 0 }
  0x82   : > { %s647_s6 = smul.u32 96, %s234_s26  ;;  %s235_s9 = scalar_lea.sflag [#allocation3], %s234_s26 }
  0x84   : > { %s1260_s5 = scalar_lea.vmem [#allocation6], %s647_s6 }
  0x85   : > { %928 = dma.done.wait (%p1526_p10), %s235_s9, 1536  }
  0x86   : > { %930 = vsyncadd (%p1526_p10), %s235_s9, 4294965760  ;;  %s1267_s3 = sand.u32 1, %s945_s13   ;;  %p1527_p8 = scmp.ne.s32.totalorder %s1508_s28, 0 }
  0x87   : > { %s622_s18 = sshll.u32 %s1267_s3, 3  ;;  %s244_s25 = scalar_lea.sflag [#allocation8], %s1267_s3 }
  0x88   : > { %s247_s30 = scalar_lea.vmem [#allocation7], %s622_s18 }
  0x89   : > { %932 = dma.done.wait (%p1527_p8), %s244_s25, 128  }
  0x8a   : > { %934 = vsyncadd (%p1527_p8), %s244_s25, 4294967168 }
  0x8b   : > { %252 = sfence }
  0x8c   : > { %s1528_s0 = sld [smem:[#allocation15_spill]]  ;;  %s624_s12 = sshll.u32 %s969_s19, 1  ;;  %v1296_v1 = vld [vmem:[%s247_s30] sm:$0xff]  ;;  %v1317_v9 = vld [vmem:[%s1260_s5 + $0x10] sm:$0xff]  ;;  %v287_v36 = vld [vmem:[%s1260_s5 + $0x18] sm:$0xff] }
  0x8d   : > { %v1303_v3 = vld [vmem:[%s1260_s5] sm:$0xff]  ;;  %v1306_v4 = vld [vmem:[%s1260_s5 + $0x8] sm:$0xff]  ;;  %v427_v7 = vunpack.c.0.s8 %v1296_v1  ;;  %v428_v8 = vunpack.c.1.s8 %v1296_v1  ;;  %v429_v10 = vunpack.c.2.s8 %v1296_v1  ;;  %v1345_v22 = vld [vmem:[%s1260_s5 + $0x30] sm:$0xff] }
  0x8e   : > { %v1310_v5 = vld [vmem:[%s1260_s5 + $0x20] sm:$0xff]  ;;  %v1327_v14 = vld [vmem:[%s1260_s5 + $0x28] sm:$0xff]  ;;  %v1351_v26 = vld [vmem:[%s1260_s5 + $0x50] sm:$0xff] }
  0x8f   : > { %v1322_v11 = vld [vmem:[%s1260_s5 + $0x40] sm:$0xff]  ;;  %v1330_v15 = vld [vmem:[%s1260_s5 + $0x48] sm:$0xff]  ;;  %v1370_v37 = vld [vmem:[%s1260_s5 + $0x38] sm:$0xff] }
  0x90   : > { %v632_v42 = vld [vmem:[%s1260_s5 + $0x58] sm:$0xff] }
  0x92   : > { %s1277_s27 = sadd.s32 %s1528_s0, %s624_s12 }
  0x93   : > { %s1280_s23 = sshll.u32 %s1277_s27, 7 }
  0x94   : > { %s299_s24 = sld [smem:[#allocation2 + %s1280_s23]]  ;;  %s305_s28 = sadd.s32 1, %s1280_s23 }
  0x95   : > { %s306_s29 = sld [smem:[#allocation2 + %s305_s28]]  ;;  %s316_s8 = sadd.s32 2, %s1280_s23 }
  0x96   : > { %s1285_s19 = sld [smem:[#allocation2 + %s316_s8]]  ;;  %s327_s15 = sadd.s32 3, %s1280_s23 }
  0x97   : > { %s1288_s7 = sld [smem:[#allocation2 + %s327_s15]]  ;;  %s370_s11 = sadd.s32 8, %s1280_s23 }
  0x98   : > { %s371_s26 = sld [smem:[#allocation2 + %s370_s11]]  ;;  %s377_s6 = sadd.s32 9, %s1280_s23 }
  0x99   : > { %s378_s9 = sld [smem:[#allocation2 + %s377_s6]]  ;;  %s388_s18 = sadd.s32 10, %s1280_s23 }
  0x9a   : > { %v1293_v0 = vstv %s299_s24  ;;  %s389_s25 = sld [smem:[#allocation2 + %s388_s18]]  ;;  %s399_s0 = sadd.s32 11, %s1280_s23 }
  0x9b   : > { %v1298_v2 = vstv %s306_s29  ;;  %s1300_s12 = sld [smem:[#allocation2 + %s399_s0]]  ;;  %s334_s28 = sadd.s32 4, %s1280_s23  ;;  %v301_v6 = vmul.f32 %v1293_v0, %v1303_v3  ;;  %v302_v16 = vmul.f32 %v1293_v0, %v1306_v4  ;;  %v303_v17 = vmul.f32 %v1293_v0, %v1317_v9 }
  0x9c   : > { %s341_s30 = sadd.s32 5, %s1280_s23  ;;  %v308_v12 = vmul.f32 %v1310_v5, %v1298_v2  ;;  %s1336_s24 = sld [smem:[#allocation2 + %s334_s28]]  ;;  %v1340_v18 = vstv %s1285_s19  ;;  %v309_v25 = vmul.f32 %v1327_v14, %v1298_v2  ;;  %v310_v27 = vmul.f32 %v1345_v22, %v1298_v2 }
  0x9d   : > { %s352_s29 = sadd.s32 6, %s1280_s23  ;;  %s1355_s8 = sld [smem:[#allocation2 + %s341_s30]]  ;;  %v319_v33 = vmul.f32 %v1322_v11, %v1340_v18  ;;  %v1366_v34 = vstv %s1288_s7  ;;  %v320_v45 = vmul.f32 %v1330_v15, %v1340_v18  ;;  %v1380_v46 = vmul.f32 %v1351_v26, %v1340_v18 }
  0x9e   : > { %v372_v13 = vstv %s371_s26  ;;  %s1357_s19 = sld [smem:[#allocation2 + %s352_s29]]  ;;  %v312_v32 = vadd.f32 %v308_v12, %v301_v6  ;;  %v313_v44 = vadd.f32 %v309_v25, %v302_v16  ;;  %v314_v52 = vadd.f32 %v310_v27, %v303_v17  ;;  %s363_s5 = sadd.s32 7, %s1280_s23 }
  0x9f   : > { %v373_v19 = vmul.f32 %v372_v13, %v1303_v3  ;;  %v379_v20 = vstv %s378_s9  ;;  %v374_v21 = vmul.f32 %v372_v13, %v1306_v4  ;;  %v375_v31 = vmul.f32 %v372_v13, %v1317_v9  ;;  %s364_s15 = sld [smem:[#allocation2 + %s363_s5]]  ;;  %s623_s23 = sshll.u32 %s1267_s3, 6 }
  0xa0   : > { %v380_v23 = vmul.f32 %v1310_v5, %v379_v20  ;;  %v390_v24 = vstv %s389_s25  ;;  %v381_v29 = vmul.f32 %v1327_v14, %v379_v20  ;;  %v382_v40 = vmul.f32 %v1345_v22, %v379_v20  ;;  %s275_s7 = scalar_lea.vmem [#allocation9], %s623_s23  ;;  %s644_s26 = sshll.u32 %s1277_s27, 10 }
  0xa1   : > { %v391_v28 = vmul.f32 %v1322_v11, %v390_v24  ;;  %v392_v30 = vmul.f32 %v1330_v15, %v390_v24  ;;  %v401_v38 = vstv %s1300_s12  ;;  %v393_v41 = vmul.f32 %v1351_v26, %v390_v24  ;;  %s474_s11 = sshll.u32 %s275_s7, 4  ;;  %s1530_s25 = sld [smem:[#allocation21_spill]]  ;;  %s1415_s11 = int_to_ptr.vmem [resolvable:$true] %s474_s11 }
  0xa2   : > { %v384_v35 = vadd.f32 %v380_v23, %v373_v19  ;;  %v385_v39 = vadd.f32 %v381_v29, %v374_v21  ;;  %v386_v48 = vadd.f32 %v382_v40, %v375_v31  ;;  %v376_v49 = vmul.f32 %v372_v13, %v287_v36  ;;  %s457_s27 = scalar_lea.sflag [#allocation4], %s1267_s3  ;;  %s851_s12 = scalar_lea.vmem %s1415_s11, 1024 }
  0xa3   : > { %v383_v50 = vmul.f32 %v1370_v37, %v379_v20  ;;  %v394_v53 = vmul.f32 %v632_v42, %v390_v24  ;;  %v336_v54 = vstv %s1336_s24  ;;  %v323_v55 = vadd.f32 %v319_v33, %v312_v32  ;;  %p852_p13 = scmp.ne.s32.totalorder %s1415_s11, %s851_s12  ;;  %s988_s28 = smov [#allocation9]  }
  0xa4   : > { %v395_v43 = vadd.f32 %v391_v28, %v384_v35  ;;  %v396_v47 = vadd.f32 %v392_v30, %v385_v39  ;;  %v397_v57 = vadd.f32 %v393_v41, %v386_v48  ;;  %v337_v60 = vmul.f32 %v336_v54, %v1303_v3  ;;  %s855_s30 = sshll.u32 %s988_s28, 4  ;;  %s856_s30 = int_to_ptr.vmem [resolvable:$false] %s855_s30 }
  0xa5   : > { %v387_v58 = vadd.f32 %v383_v50, %v376_v49  ;;  %v343_v61 = vstv %s1355_s8  ;;  %v354_v62 = vstv %s1357_s19  ;;  %v304_v16 = vmul.f32 %v1293_v0, %v287_v36  ;;  %p853_p9 = pnand %p852_p13, %p1195_p12  ;;  %s857_s24 = scalar_lea.vmem %s856_s30, 2048 }
  0xa6   : > { %v402_v51 = vadd.f32 %v401_v38, %v395_v43  ;;  %v403_v56 = vadd.f32 %v401_v38, %v396_v47  ;;  %v404_v6 = vadd.f32 %v401_v38, %v397_v57  ;;  %v344_v13 = vmul.f32 %v1310_v5, %v343_v61  ;;  %p858_p3 = scmp.lt.s32.totalorder %s1415_s11, %s856_s30  ;;  %p859_p0 = scmp.lt.s32.totalorder %s857_s24, %s851_s12 }
  0xa7   : > { %v398_v12 = vadd.f32 %v394_v53, %v387_v58  ;;  %v311_v17 = vmul.f32 %v1370_v37, %v1298_v2  ;;  %v355_v19 = vmul.f32 %v1322_v11, %v354_v62  ;;  %v338_v25 = vmul.f32 %v336_v54, %v1306_v4  ;;  %s1420_s0 = scalar_lea.hbm %s1530_s25, %s644_s26  ;;  %p854_p7 = pneg %p853_p9 }
  0xa8   : > { %v406_v59 = vand.u32 2147483647, %v402_v51  ;;  %v407_v63 = vand.u32 2147483647, %v403_v56  ;;  %v408_v21 = vand.u32 2147483647, %v404_v6  ;;  %v348_v24 = vadd.f32 %v344_v13, %v337_v60  ;;  %p860_p5 = por %p859_p0, %p858_p3 }
  0xa9   : > { %v405_v3 = vadd.f32 %v401_v38, %v398_v12  ;;  %v345_v0 = vmul.f32 %v1327_v14, %v343_v61  ;;  %v322_v2 = vmul.f32 %v632_v42, %v1340_v18  ;;  %v356_v11 = vmul.f32 %v1330_v15, %v354_v62 }
  0xaa   : > { %vm410_vm0 = vcmp.lt.f32.partialorder %v406_v59, 1e-06  ;;  %vm411_vm1 = vcmp.lt.f32.partialorder %v407_v63, 1e-06  ;;  %vm412_vm2 = vcmp.lt.f32.partialorder %v408_v21, 1e-06  ;;  %v339_v28 = vmul.f32 %v336_v54, %v1317_v9  ;;  %p861_p1 = pnand %p860_p5, %p854_p7 }
  0xab   : > { %v414_v20 = vsel %vm410_vm0, 1e-06, %v402_v51  ;;  %v415_v23 = vsel %vm411_vm1, 1e-06, %v403_v56  ;;  %v409_v5 = vand.u32 2147483647, %v405_v3  ;;  %v349_v29 = vadd.f32 %v345_v0, %v338_v25 }
  0xac   : > { %770 = vrcp.f32 %v414_v20  ;;  %v416_v27 = vsel %vm412_vm2, 1e-06, %v404_v6  ;;  %v346_v30 = vmul.f32 %v1345_v22, %v343_v61  ;;  %v315_v31 = vadd.f32 %v311_v17, %v304_v16 }
  0xad   : > { %772 = vrcp.f32 %v415_v23  ;;  %vm413_vm3 = vcmp.lt.f32.partialorder %v409_v5, 1e-06  ;;  %v357_v32 = vmul.f32 %v1351_v26, %v354_v62  ;;  %v340_v33 = vmul.f32 %v336_v54, %v287_v36 }
  0xae   : > { %774 = vrcp.f32 %v416_v27  ;;  %v417_v4 = vsel %vm413_vm3, 1e-06, %v405_v3  ;;  %v359_v14 = vadd.f32 %v355_v19, %v348_v24  ;;  %v350_v35 = vadd.f32 %v346_v30, %v339_v28 }
  0xaf   : > { %776 = vrcp.f32 %v417_v4  ;;  %v347_v18 = vmul.f32 %v1370_v37, %v343_v61  ;;  %v324_v38 = vadd.f32 %v320_v45, %v313_v44  ;;  %v365_v15 = vstv %s364_s15 }
  0xb0   : > { %v360_v39 = vadd.f32 %v356_v11, %v349_v29  ;;  %v358_v9 = vmul.f32 %v632_v42, %v354_v62  ;;  %v431_v40 = vcvt.s32.f32 %v427_v7  ;;  %v432_v22 = vcvt.s32.f32 %v428_v8 }
  0xb1   : > { %v351_v41 = vadd.f32 %v347_v18, %v340_v33  ;;  %v325_v26 = vadd.f32 %v1380_v46, %v314_v52  ;;  %v430_v36 = vunpack.c.3.s8 %v1296_v1  ;;  %v361_v43 = vadd.f32 %v357_v32, %v350_v35 }
  0xb2   : > { %v330_v47 = vadd.f32 %v1366_v34, %v323_v55  ;;  %v326_v37 = vadd.f32 %v322_v2, %v315_v31  ;;  %v366_v44 = vadd.f32 %v365_v15, %v359_v14  ;;  %v331_v42 = vadd.f32 %v1366_v34, %v324_v38 }
  0xb3   : > { %v433_v48 = vcvt.s32.f32 %v429_v10  ;;  %v367_v7 = vadd.f32 %v365_v15, %v360_v39  ;;  %v362_v49 = vadd.f32 %v358_v9, %v351_v41  ;;  %v332_v46 = vadd.f32 %v1366_v34, %v325_v26 }
  0xb4   : > { %v434_v52 = vcvt.s32.f32 %v430_v36  ;;  %v368_v53 = vadd.f32 %v365_v15, %v361_v43  ;;  %v333_v56 = vadd.f32 %v1366_v34, %v326_v37 }
  0xb5   : > { %v369_v59 = vadd.f32 %v365_v15, %v362_v49 }
  0xb6   : > { %v771_v45 = vpop.eup %770 }
  0xb7   : > { %v773_v50 = vpop.eup %772  ;;  %v435_v8 = vmul.f32 %v771_v45, %v431_v40 }
  0xb8   : > { %v436_v51 = vmul.f32 %v773_v50, %v432_v22  ;;  %v775_v54 = vpop.eup %774 }
  0xb9   : > { %v439_v55 = vmul.f32 %v435_v8, %v330_v47  ;;  %v447_v57 = vmul.f32 %v435_v8, %v366_v44  ;;  %v437_v1 = vmul.f32 %v775_v54, %v433_v48  ;;  %v777_v60 = vpop.eup %776 }
  0xba   : > { %v440_v58 = vmul.f32 %v436_v51, %v331_v42  ;;  %v448_v10 = vmul.f32 %v436_v51, %v367_v7  ;;  %v438_v62 = vmul.f32 %v777_v60, %v434_v52 }
  0xbb   : > { %443 = vst [vmem:[%s275_s7] sm:$0xff] %v439_v55  ;;  %634 = vst [vmem:[%s275_s7 + $0x20] sm:$0xff] %v447_v57  ;;  %v441_v61 = vmul.f32 %v437_v1, %v332_v46  ;;  %v449_v34 = vmul.f32 %v437_v1, %v368_v53 }
  0xbc   : > { %444 = vst [vmem:[%s275_s7 + $0x8] sm:$0xff] %v440_v58  ;;  %635 = vst [vmem:[%s275_s7 + $0x28] sm:$0xff] %v448_v10  ;;  %v442_v63 = vmul.f32 %v438_v62, %v333_v56  ;;  %v450_v6 = vmul.f32 %v438_v62, %v369_v59 }
  0xbd   : > { %445 = vst [vmem:[%s275_s7 + $0x10] sm:$0xff] %v441_v61  ;;  %636 = vst [vmem:[%s275_s7 + $0x30] sm:$0xff] %v449_v34 }
  0xbe   : > { %446 = vst [vmem:[%s275_s7 + $0x18] sm:$0xff] %v442_v63  ;;  %637 = vst [vmem:[%s275_s7 + $0x38] sm:$0xff] %v450_v6 }
  0xbf   : > { %864 = shalt.err (!%p861_p1)
}
  0xc0   : > { %s865_s29 = scalar_lea.hbm %s1420_s0, 1024  ;;  %s869_s5 = scalar_lea.hbm %s1530_s25, 4096 }
  0xc1   : > { %p866_p4 = scmp.ne.s32.totalorder %s1420_s0, %s865_s29  ;;  %p870_p11 = scmp.lt.u32.totalorder %s1420_s0, %s1530_s25 }
  0xc2   : > { %p871_p10 = scmp.lt.u32.totalorder %s869_s5, %s865_s29  ;;  %p873_p13 = scmp.lt.u32.totalorder %s865_s29, %s1420_s0 }
  0xc3   : > { %p867_p6 = pnand %p866_p4, %p1195_p12 }
  0xc4   : > { %p872_p8 = por %p871_p10, %p870_p11 }
  0xc5   : > { %p868_p2 = pneg %p867_p6 }
  0xc6   : > { %p874_p9 = por %p873_p13, %p872_p8 }
  0xc8   : > { %p875_p7 = pnand %p874_p9, %p868_p2 }
  0xca   : > { %878 = shalt.err (!%p875_p7)
}
  0xcb   : > { %s989_s7 = smov 128   ;;  %s990_s26 = smov 8  }
  0xcc   : > { %656 = dma.vmem_to_hbm [thread:$0]  (%p1195_p12), %s1415_s11, 1024, %s1420_s0, %s457_s27, %s989_s7, %s989_s7, %s990_s26  }
  0xcd PF: > { %s1531_s9 = sld [smem:[#allocation14_spill]]  ;;  %s1532_s18 = sld [smem:[#allocation17_spill]] }
  0xce   : > { %p676_p3 = scmp.ge.s32.totalorder %s981_s22, 2 }
  0xd3   : > { %s489_s12 = sand.u32 1, %s1531_s9   ;;  %p1533_p0 = scmp.ne.s32.totalorder %s1532_s18, 0 }
  0xd4   : > { %s490_s28 = scalar_lea.sflag [#allocation4], %s489_s12 }
  0xd5   : > { %p670_p5 = pnand %p676_p3, %p1533_p0 }
  0xd7   : > { %936 = dma.done.wait (!%p670_p5), %s490_s28, 1024  }
  0xd8   : > { %938 = vsyncadd (!%p670_p5), %s490_s28, 4294966272  ;;  %s23_s22 = sadd.s32 1, %s981_s22   ;;  %s1534_s18 = sld [smem:[#allocation16_spill]] }
  0xd9   : > { %p20_p1 = scmp.ge.s32.totalorder %s23_s22, 6   ;;  %s1535_s12 = smov %s945_s13 }
  0xda   : > { %s1536_s13 = smov %s949_s14  ;;  %s1537_s14 = smov %s1224_s1 }
  0xdb   : > { %s1538_s15 = smov %s957_s16  ;;  %s1539_s16 = smov %s961_s17 }
  0xdc   : > { %s1540_s17 = smov %s1208_s20  ;;  %s1541_s19 = smov %s977_s21 }
  0xdd   : > { %s1542_s20 = smov %s1545_s10  ;;  %s1543_s21 = smov %s1549_s4 }
  0xde   :  { %22 = sbr.rel (!%p20_p1) target bundleno = 16 (0x10), region = 98 }
  0xe5   :  { %495 = vsyncpa [#allocation3], 1 }
  0xe6   :  { %497 = vsyncpa [#allocation3 + $0x1], 1 }
  0xe7   :  { %498 = vsyncpa [#allocation8], 1 }
  0xe8   :  { %500 = vsyncpa [#allocation8 + $0x1], 1 }
  0xe9   :  { %501 = vsyncpa [#allocation4], 1 }
  0xea   :  { %503 = vsyncpa [#allocation4 + $0x1], 1 }
  0xeb   :  { %504 = vsyncpa [#allocation5], 1 }
  0xec   :  { %506 = vsyncpa [#allocation5 + $0x1], 1 }

</bundles_post_ra>
